<compile_context>
chip_gen: v7x
topology: tpu7x:2x2x1
jax: 0.10.0
libtpu: 0.0.40
codegen_flags: <defaults>
</compile_context>

<pallas_src>
import jax
import jax.numpy as jnp
from jax.experimental import pallas as pl
from jax.experimental.pallas import tpu as pltpu


def _angular_smooth_l1_kernel(pred_ref, targ_ref, out_ref, *, beta, half_inv_beta):
    pred = pred_ref[...].astype(jnp.float32)
    targ = targ_ref[...].astype(jnp.float32)

    diff = jnp.abs(pred - targ)
    angle_diff = jnp.minimum(diff, 180.0 - diff)

    # SmoothL1Loss(angle_diff, 0) with reduction='none'
    n = jnp.abs(angle_diff)
    loss = jnp.where(n < beta, n * n * half_inv_beta, n - 0.5 * beta)

    # Per-tile partial sum: reduce sublanes only, keep the lane axis dense.
    out_ref[...] = jnp.sum(loss, axis=0, keepdims=True)


def angular_smooth_l1_loss(predictions, targets, beta=1.0):
    assert predictions.shape == targets.shape
    p = predictions.reshape(-1)
    t = targets.reshape(-1)
    total = int(p.shape[0])
    elem_bytes = p.dtype.itemsize

    # Lane-dense slab: fold the flat array into (rows, cols), cols % 128 == 0.
    cols = 1024 if total >= 8 * 1024 else 128

    # ~1 MiB per input tile (clamped to the actual data size, multiple of 8 rows).
    target_bytes = 1 << 20
    rows_total = pl.cdiv(total, cols)
    tile_rows = max(8, (target_bytes // (cols * elem_bytes)) // 8 * 8)
    tile_rows = min(tile_rows, ((rows_total + 7) // 8) * 8)

    chunk = tile_rows * cols
    num_tiles = pl.cdiv(total, chunk)
    padded = num_tiles * chunk

    pad = padded - total
    if pad:
        # Pad both operands with identical values -> their loss is exactly 0,
        # so the padded elements never affect the sum (mean divides by `total`).
        p = jnp.pad(p, (0, pad))
        t = jnp.pad(t, (0, pad))

    p2 = p.reshape(padded // cols, cols)
    t2 = t.reshape(padded // cols, cols)

    inv_count = 1.0 / float(total)
    half_inv_beta = 0.5 / float(beta)

    kernel = lambda pr, tr, o: _angular_smooth_l1_kernel(
        pr, tr, o, beta=float(beta), half_inv_beta=half_inv_beta
    )

    partials = pl.pallas_call(
        kernel,
        out_shape=jax.ShapeDtypeStruct((num_tiles, cols), jnp.float32),
        grid_spec=pltpu.PrefetchScalarGridSpec(
            num_scalar_prefetch=0,
            grid=(num_tiles,),
            in_specs=[
                pl.BlockSpec((tile_rows, cols), lambda i: (i, 0)),
                pl.BlockSpec((tile_rows, cols), lambda i: (i, 0)),
            ],
            out_specs=pl.BlockSpec((1, cols), lambda i: (i, 0)),
        ),
        compiler_params=pltpu.CompilerParams(
            # Every grid step writes its own output row -> fully parallel
            # (lets v7x shard the row-tile axis across both TensorCores).
            dimension_semantics=("parallel",),
            # Explicit headroom; 4 MiB of pipeline buffers fits on every gen.
            vmem_limit_bytes=32 * 1024 * 1024,
        ),
    )(p2, t2)

    # Tiny final cross-lane reduction + mean normalization outside the kernel.
    return jnp.sum(partials, dtype=jnp.float32) * inv_count


def _reference(predictions, targets, beta=1.0):
    predictions = predictions.astype(jnp.float32)
    targets = targets.astype(jnp.float32)
    diff = jnp.abs(predictions - targets)
    angle_diff = jnp.minimum(diff, 180.0 - diff)
    n = jnp.abs(angle_diff)
    loss = jnp.where(n < beta, 0.5 * n * n / beta, n - 0.5 * beta)
    return jnp.mean(loss)


if __name__ == "__main__":
    key = jax.random.PRNGKey(0)
    kp, kt = jax.random.split(key)
    # Small angle predictions/targets in degrees, shape (16, 128).
    predictions = jax.random.uniform(kp, (16, 128), jnp.float32) * 360.0
    targets = jax.random.uniform(kt, (16, 128), jnp.float32) * 360.0

    result = angular_smooth_l1_loss(predictions, targets, beta=1.0)
    result = jax.block_until_ready(result)

    ref = _reference(predictions, targets, beta=1.0)
    assert jnp.allclose(result, ref, rtol=1e-5, atol=1e-5), (result, ref)

    # Also exercise a ragged, non-tile-aligned shape to cover the padding path.
    kp2, kt2 = jax.random.split(jax.random.PRNGKey(1))
    pr = jax.random.uniform(kp2, (7, 33), jnp.float32) * 360.0
    tr = jax.random.uniform(kt2, (7, 33), jnp.float32) * 360.0
    r2 = jax.block_until_ready(angular_smooth_l1_loss(pr, tr, beta=1.0))
    assert jnp.allclose(r2, _reference(pr, tr, beta=1.0), rtol=1e-5, atol=1e-5)

    print("KERNEL_OK")
</pallas_src>

<mosaic_0001>
module attributes {stable_mosaic.version = 11 : i64} {
  func.func @_lambda_(%arg0: i32, %arg1: memref<16x128xf32, #tpu.memory_space<vmem>>, %arg2: memref<16x128xf32, #tpu.memory_space<vmem>>, %arg3: memref<1x128xf32, #tpu.memory_space<vmem>>) attributes {dimension_semantics = [#tpu.dimension_semantics<parallel>], iteration_bounds = array<i64: 1>, scalar_prefetch = 0 : i64, scratch_operands = 0 : i64, tpu.core_type = #tpu.core_type<tc>, window_params = [{transform_indices = @transform_0, window_bounds = array<i64: 16, 128>}, {transform_indices = @transform_1, window_bounds = array<i64: 16, 128>}, {transform_indices = @transform_2, window_bounds = array<i64: 1, 128>}]} {
    %c0 = arith.constant 0 : index
    %c0_0 = arith.constant 0 : index
    %0 = vector.load %arg1[%c0, %c0_0] : memref<16x128xf32, #tpu.memory_space<vmem>>, vector<16x128xf32>
    %c0_1 = arith.constant 0 : index
    %c0_2 = arith.constant 0 : index
    %1 = vector.load %arg2[%c0_1, %c0_2] : memref<16x128xf32, #tpu.memory_space<vmem>>, vector<16x128xf32>
    %2 = arith.subf %0, %1 : vector<16x128xf32>
    %3 = math.absf %2 : vector<16x128xf32>
    %cst = arith.constant 1.800000e+02 : f32
    %4 = vector.broadcast %cst : f32 to vector<16x128xf32>
    %5 = arith.subf %4, %3 : vector<16x128xf32>
    %6 = arith.minimumf %3, %5 : vector<16x128xf32>
    %7 = math.absf %6 : vector<16x128xf32>
    %cst_3 = arith.constant 1.000000e+00 : f32
    %8 = vector.broadcast %cst_3 : f32 to vector<16x128xf32>
    %9 = arith.cmpf olt, %7, %8 : vector<16x128xf32>
    %10 = arith.mulf %7, %7 : vector<16x128xf32>
    %cst_4 = arith.constant 5.000000e-01 : f32
    %11 = vector.broadcast %cst_4 : f32 to vector<16x128xf32>
    %12 = arith.mulf %10, %11 : vector<16x128xf32>
    %cst_5 = arith.constant 5.000000e-01 : f32
    %13 = vector.broadcast %cst_5 : f32 to vector<16x128xf32>
    %14 = arith.subf %7, %13 : vector<16x128xf32>
    %15 = arith.select %9, %12, %14 : vector<16x128xi1>, vector<16x128xf32>
    %cst_6 = arith.constant dense<0.000000e+00> : vector<128xf32>
    %16 = vector.multi_reduction <add>, %15, %cst_6 [0] : vector<16x128xf32> to vector<128xf32>
    %17 = vector.shape_cast %16 : vector<128xf32> to vector<1x128xf32>
    %c0_7 = arith.constant 0 : index
    %c0_8 = arith.constant 0 : index
    %18 = vector.load %arg3[%c0_7, %c0_8] : memref<1x128xf32, #tpu.memory_space<vmem>>, vector<1x128xf32>
    tpu.vector_store %arg3[%c0_7, %c0_8], %17 {strides = array<i32>} : memref<1x128xf32, #tpu.memory_space<vmem>>, vector<1x128xf32>,
    return
  }
  func.func @transform_0(%arg0: i32) -> (i32, i32) {
    %c0_i32 = arith.constant 0 : i32
    %c0_i32_0 = arith.constant 0 : i32
    return %arg0, %c0_i32 : i32, i32
  }
  func.func @transform_1(%arg0: i32) -> (i32, i32) {
    %c0_i32 = arith.constant 0 : i32
    %c0_i32_0 = arith.constant 0 : i32
    return %arg0, %c0_i32 : i32, i32
  }
  func.func @transform_2(%arg0: i32) -> (i32, i32) {
    %c0_i32 = arith.constant 0 : i32
    %c0_i32_0 = arith.constant 0 : i32
    return %arg0, %c0_i32 : i32, i32
  }
}

</mosaic_0001>

<bundles_post_ra>
// kernel: tpu_custom_call.1
= control target key start
LH: loop header
LB: loop body
LE: loop exit
PB: predicated region body
PF: predicated region fallthrough
CT: control target
= control target key end

     0   :  { %7 = vsyncpa [#allocation3], 0  ;;  %s223_s0 = inlined_call_operand.hbm [shape: f32[16,128], index: 0, kind: input, shape index: {}]   ;;  %s224_s1 = inlined_call_operand.hbm [shape: f32[16,128], index: 1, kind: input, shape index: {}]   ;;  %s225_s2 = inlined_call_operand.hbm [shape: f32[1,128], index: 2, kind: output, shape index: {}]  }
   0x1   :  { %8 = vsyncpa [#allocation6], 0 }
   0x2   :  { %9 = vsyncpa [#allocation4], 0  ;;  %s167_s9 = smov [#allocation2]   ;;  %s95_s13 = scalar_lea.hbm %s223_s0, 256 }
   0x3   :  { %s15_s10 = sshll.u32 %s167_s9, 4  ;;  %p96_p0 = scmp.ne.s32.totalorder %s223_s0, %s95_s13  ;;  %s16_s10 = int_to_ptr.vmem [resolvable:$true] %s15_s10 }
   0x4   :  { %p99_p1 = scmp.lt.u32.totalorder %s95_s13, %s223_s0 }
   0x6   :  { %p101_p2 = pnand %p99_p1, %p96_p0 }
   0x8   :  { %104 = shalt.err (!%p101_p2)
}
   0x9   :  { %s105_s18 = scalar_lea.vmem %s16_s10, 256  ;;  %p110_p4 = scmp.lt.s32.totalorder %s16_s10, %s16_s10 }
   0xa   :  { %p106_p3 = scmp.ne.s32.totalorder %s16_s10, %s105_s18  ;;  %p111_p5 = scmp.lt.s32.totalorder %s105_s18, %s105_s18 }
   0xc   :  { %p112_p6 = por %p111_p5, %p110_p4 }
   0xe   :  { %p113_p7 = pnand %p112_p6, %p106_p3 }
  0x10   :  { %116 = shalt.err (!%p113_p7)
}
  0x11   :  { %s168_s19 = smov 128   ;;  %s169_s20 = smov 8  }
  0x12   :  { %21 = dma.hbm_to_vmem [thread:$0]  %s223_s0, 256, %s16_s10, [#allocation3], %s168_s19, %s168_s19, %s169_s20  }
  0x13   :  { %s170_s23 = smov [#allocation5]   ;;  %s117_s27 = scalar_lea.hbm %s224_s1, 256 }
  0x14   :  { %s27_s24 = sshll.u32 %s170_s23, 4  ;;  %p118_p8 = scmp.ne.s32.totalorder %s224_s1, %s117_s27  ;;  %s28_s24 = int_to_ptr.vmem [resolvable:$true] %s27_s24 }
  0x15   :  { %p121_p9 = scmp.lt.u32.totalorder %s117_s27, %s224_s1 }
  0x17   :  { %p123_p10 = pnand %p121_p9, %p118_p8 }
  0x19   :  { %126 = shalt.err (!%p123_p10)
}
  0x1a   :  { %s127_s4 = scalar_lea.vmem %s28_s24, 256  ;;  %p132_p12 = scmp.lt.s32.totalorder %s28_s24, %s28_s24 }
  0x1b   :  { %p128_p11 = scmp.ne.s32.totalorder %s28_s24, %s127_s4  ;;  %p133_p13 = scmp.lt.s32.totalorder %s127_s4, %s127_s4 }
  0x1d   :  { %p134_p0 = por %p133_p13, %p132_p12 }
  0x1f   :  { %p135_p1 = pnand %p134_p0, %p128_p11 }
  0x21   :  { %138 = shalt.err (!%p135_p1)
}
  0x22   :  { %33 = dma.hbm_to_vmem [thread:$0]  %s224_s1, 256, %s28_s24, [#allocation6], %s168_s19, %s168_s19, %s169_s20  }
  0x23   :  { %161 = dma.done.wait [#allocation3], 256  }
  0x24   :  { %162 = vsyncadd [#allocation3], 4294967040 }
  0x25   :  { %163 = dma.done.wait [#allocation6], 256  }
  0x26   :  { %164 = vsyncadd [#allocation6], 4294967040  ;;  %v40_v0 = vld [vmem:[#allocation2] sm:$0xff]  ;;  %v41_v1 = vld [vmem:[#allocation2 + $0x8] sm:$0xff]  ;;  %s171_s1 = smov [#allocation7]  }
  0x27   :  { %v42_v2 = vld [vmem:[#allocation5] sm:$0xff]  ;;  %v43_v3 = vld [vmem:[#allocation5 + $0x8] sm:$0xff]  ;;  %s78_s6 = sshll.u32 %s171_s1, 4  ;;  %s79_s6 = int_to_ptr.vmem [resolvable:$true] %s78_s6 }
  0x28   :  { %v44_v4 = vsub.f32 %v40_v0, %v42_v2  ;;  %v45_v5 = vsub.f32 %v41_v1, %v43_v3  ;;  %s139_s7 = scalar_lea.vmem %s79_s6, 16  ;;  %s143_s8 = scalar_lea.vmem %s79_s6, 32 }
  0x29   :  { %p140_p2 = scmp.ne.s32.totalorder %s79_s6, %s139_s7  ;;  %p144_p3 = scmp.lt.s32.totalorder %s79_s6, %s79_s6 }
  0x2a   :  { %v46_v6 = vand.u32 2147483647, %v44_v4  ;;  %v47_v7 = vand.u32 2147483647, %v45_v5  ;;  %p145_p4 = scmp.lt.s32.totalorder %s143_s8, %s139_s7 }
  0x2c   :  { %v48_v8 = vsub.f32 180.0, %v46_v6  ;;  %v49_v9 = vsub.f32 180.0, %v47_v7  ;;  %p146_p5 = por %p145_p4, %p144_p3 }
  0x2e   :  { %v50_v10 = vmin.f32 %v46_v6, %v48_v8  ;;  %v51_v11 = vmin.f32 %v47_v7, %v49_v9  ;;  %p147_p6 = pnand %p146_p5, %p140_p2 }
  0x30   :  { %v52_v12 = vand.u32 2147483647, %v50_v10  ;;  %v53_v13 = vand.u32 2147483647, %v51_v11 }
  0x32   :  { %v56_v14 = vmul.f32 %v52_v12, %v52_v12  ;;  %v88_v15 = vadd.f32 -0.5, %v52_v12  ;;  %vm54_vm0 = vcmp.lt.f32.partialorder %v52_v12, 1.0  ;;  %v57_v16 = vmul.f32 %v53_v13, %v53_v13 }
  0x33   :  { %v89_v17 = vadd.f32 -0.5, %v53_v13  ;;  %vm55_vm1 = vcmp.lt.f32.partialorder %v53_v13, 1.0 }
  0x34   :  { %v58_v18 = vmul.f32 0.5, %v56_v14  ;;  %v59_v19 = vmul.f32 0.5, %v57_v16 }
  0x36   :  { %v62_v20 = vsel %vm54_vm0, %v58_v18, %v88_v15  ;;  %v63_v21 = vsel %vm55_vm1, %v59_v19, %v89_v17 }
  0x37   :  { %v64_v22 = vadd.f32 %v63_v21, %v62_v20 }
  0x39   :  { %v65_v23 = vrot.slane %v64_v22, 4 }
  0x3b   :  { %v66_v24 = vadd.f32 %v65_v23, %v64_v22 }
  0x3d   :  { %v67_v25 = vrot.slane %v66_v24, 2 }
  0x3f   :  { %v68_v26 = vadd.f32 %v67_v25, %v66_v24 }
  0x41   :  { %v69_v27 = vrot.slane %v68_v26, 1 }
  0x43   :  { %v70_v28 = vadd.f32 %v69_v27, %v68_v26 }
  0x45   :  { %71 = vst [vmem:[#allocation7] sm:$0x1] %v70_v28 }
  0x46   :  { %150 = shalt.err (!%p147_p6)
}
  0x47   :  { %s151_s11 = scalar_lea.hbm %s225_s2, 16 }
  0x48   :  { %p152_p7 = scmp.ne.s32.totalorder %s225_s2, %s151_s11  ;;  %p155_p8 = scmp.lt.u32.totalorder %s151_s11, %s225_s2 }
  0x4a   :  { %p157_p9 = pnand %p155_p8, %p152_p7 }
  0x4c   :  { %160 = shalt.err (!%p157_p9)
}
  0x4d   :  { %81 = dma.vmem_to_hbm [thread:$0]  %s79_s6, 16, %s225_s2, [#allocation4]  }
  0x4e   :  { %165 = dma.done.wait [#allocation4], 16  }
  0x4f   :  { %166 = vsyncadd [#allocation4], 4294967280 }
  0x50   :  { %85 = vsyncpa [#allocation3], 1 }
  0x51   :  { %86 = vsyncpa [#allocation6], 1 }
  0x52   :  { %87 = vsyncpa [#allocation4], 1 }

</bundles_post_ra>
